<compile_context>
chip_gen: v6e
topology: v6e:2x2x1
jax: 0.10.0
libtpu: 0.0.40
codegen_flags: <defaults>
</compile_context>

<pallas_src>
import functools

import jax
import jax.numpy as jnp
from jax import lax
from jax.experimental import pallas as pl
from jax.experimental.pallas import tpu as pltpu


def _lstm_kernel(x_ref, w_ref, b_ref, wl_ref, bl_ref, out_ref, xh_sc, c_sc,
                 *, num_out):
    """Full LSTM recurrence + Linear + softmax in a single invocation.

    x_ref : (T, Bp, I)   input, time-major, batch padded to a multiple of 8 sublanes
    w_ref : (I+H, 4H)    fused [W_ih^T ; W_hh^T]  (gate order i, f, g, o)
    b_ref : (1, 4H)      b_ih + b_hh
    wl_ref: (H, Op)      Linear W^T, lane-padded to 128
    bl_ref: (1, Op)      Linear bias, lane-padded to 128
    out_ref:(Bp, Op)     softmax(logits), padded; wrapper slices to (B, O)
    xh_sc : (Bp, I+H)    persistent [x_t | h] scratch (single fused-matmul operand)
    c_sc  : (Bp, H)      cell state scratch
    """
    T = x_ref.shape[0]
    I = x_ref.shape[-1]
    H = c_sc.shape[-1]

    xh_sc[...] = jnp.zeros_like(xh_sc)   # h_0 = 0 lives in lanes [I : I+H]
    c_sc[...] = jnp.zeros_like(c_sc)

    def step(t, carry):
        xh_sc[:, 0:I] = x_ref[t]                                    # (Bp, I)
        # One fused MXU pass: (Bp, I+H) x (I+H, 4H) -> (Bp, 4H)
        gates = (jnp.dot(xh_sc[...], w_ref[...],
                         preferred_element_type=jnp.float32)
                 + b_ref[...])
        # Full-tile activations (2 EUP passes over the 128-lane tile), slice after.
        sig = jax.nn.sigmoid(gates)
        th = jnp.tanh(gates)
        i_g = sig[:, 0 * H:1 * H]
        f_g = sig[:, 1 * H:2 * H]
        g_g = th[:, 2 * H:3 * H]
        o_g = sig[:, 3 * H:4 * H]
        c_new = f_g * c_sc[...] + i_g * g_g
        c_sc[...] = c_new
        xh_sc[:, I:I + H] = o_g * jnp.tanh(c_new)                   # h_t
        return carry

    # T is static and small -> fully unrolled, visible to the LLO scheduler.
    lax.fori_loop(0, T, step, 0, unroll=True)

    # Dropout is identity in eval mode (self.training == False).
    # TODO(synk): training-mode dropout would use pltpu.prng_seed / stateful_bernoulli.
    h_last = xh_sc[:, I:I + H]
    logits = (jnp.dot(h_last, wl_ref[...], preferred_element_type=jnp.float32)
              + bl_ref[...])                                        # (Bp, Op)
    lane = lax.broadcasted_iota(jnp.int32, logits.shape, 1)
    valid = lane < num_out                                          # mask padded lanes
    logits = jnp.where(valid, logits, -1e30)
    m = jnp.max(logits, axis=-1, keepdims=True)
    e = jnp.where(valid, jnp.exp(logits - m), 0.0)
    out_ref[...] = (e / jnp.sum(e, axis=-1, keepdims=True)).astype(out_ref.dtype)


def lstm_net_forward(x, w_ih, w_hh, b_ih, b_hh, w_lin, b_lin):
    """x: (B, T, I) float32 (batch_first). Returns softmax(Linear(h_T)) of shape (B, O)."""
    B, T, I = x.shape
    H = w_hh.shape[1]
    O = w_lin.shape[0]

    Bp = max(8, ((B + 7) // 8) * 8)          # pad batch to full sublanes (free: same vregs)
    Op = ((O + 127) // 128) * 128            # pad output to full 128 lanes (lane-dense store)

    x32 = jnp.asarray(x, jnp.float32)
    x_pad = jnp.zeros((Bp, T, I), jnp.float32).at[:B].set(x32)
    x_tm = jnp.transpose(x_pad, (1, 0, 2))   # (T, Bp, I): dynamic time index on leading axis

    # Fused gate weight [W_ih^T ; W_hh^T] : (I+H, 4H); combined gate bias.
    w_cat = jnp.concatenate([jnp.asarray(w_ih, jnp.float32).T,
                             jnp.asarray(w_hh, jnp.float32).T], axis=0)
    b = (jnp.asarray(b_ih, jnp.float32)
         + jnp.asarray(b_hh, jnp.float32)).reshape(1, 4 * H)

    wl_pad = jnp.zeros((H, Op), jnp.float32).at[:, :O].set(
        jnp.asarray(w_lin, jnp.float32).T)
    bl_pad = jnp.zeros((1, Op), jnp.float32).at[:, :O].set(
        jnp.asarray(b_lin, jnp.float32).reshape(1, O))

    vmem = lambda: pl.BlockSpec(memory_space=pltpu.MemorySpace.VMEM)
    out = pl.pallas_call(
        functools.partial(_lstm_kernel, num_out=O),
        out_shape=jax.ShapeDtypeStruct((Bp, Op), jnp.float32),
        in_specs=[vmem(), vmem(), vmem(), vmem(), vmem()],   # everything resident in VMEM
        out_specs=vmem(),
        scratch_shapes=[
            pltpu.VMEM((Bp, I + H), jnp.float32),   # [x_t | h]
            pltpu.VMEM((Bp, H), jnp.float32),       # c
        ],
    )(x_tm, w_cat, b, wl_pad, bl_pad)
    return out[:B, :O]


def _reference_forward(x, w_ih, w_hh, b_ih, b_hh, w_lin, b_lin):
    """Pure-JAX reference matching torch semantics (eval mode)."""
    B, T, I = x.shape
    H = w_hh.shape[1]
    h = jnp.zeros((B, H), jnp.float32)
    c = jnp.zeros((B, H), jnp.float32)
    for t in range(T):
        g = x[:, t, :] @ w_ih.T + b_ih + h @ w_hh.T + b_hh
        i_g = jax.nn.sigmoid(g[:, 0 * H:1 * H])
        f_g = jax.nn.sigmoid(g[:, 1 * H:2 * H])
        g_g = jnp.tanh(g[:, 2 * H:3 * H])
        o_g = jax.nn.sigmoid(g[:, 3 * H:4 * H])
        c = f_g * c + i_g * g_g
        h = o_g * jnp.tanh(c)
    logits = h @ w_lin.T + b_lin
    return jax.nn.softmax(logits, axis=1)


if __name__ == "__main__":
    # Small shapes consistent with the module's forward.
    B, T, I, H, O = 2, 8, 16, 32, 4

    key = jax.random.PRNGKey(0)
    k_x, k_ih, k_hh, k_bih, k_bhh, k_wl, k_bl = jax.random.split(key, 7)

    # Input sequence (batch_first): (B, T, I)
    x = jax.random.normal(k_x, (B, T, I), jnp.float32)

    # Deterministic parameter init mirroring the module's __init__ shapes.
    # xavier_normal_ for weight_ih_l0: std = sqrt(2 / (fan_in + fan_out))
    xav_std = jnp.sqrt(2.0 / (4 * H + I))
    w_ih = xav_std * jax.random.normal(k_ih, (4 * H, I), jnp.float32)
    # orthogonal_ for weight_hh_l0: QR of a random normal matrix
    a = jax.random.normal(k_hh, (4 * H, H), jnp.float32)
    q, r = jnp.linalg.qr(a)
    w_hh = q * jnp.sign(jnp.diag(r))[None, :]                # (4H, H), orthonormal cols
    # biases / linear: PyTorch default uniform(-1/sqrt(H), 1/sqrt(H))
    bound = 1.0 / jnp.sqrt(H)
    b_ih = jax.random.uniform(k_bih, (4 * H,), jnp.float32, -bound, bound)
    b_hh = jax.random.uniform(k_bhh, (4 * H,), jnp.float32, -bound, bound)
    w_lin = jax.random.uniform(k_wl, (O, H), jnp.float32, -bound, bound)
    b_lin = jax.random.uniform(k_bl, (O,), jnp.float32, -bound, bound)

    out = lstm_net_forward(x, w_ih, w_hh, b_ih, b_hh, w_lin, b_lin)
    out = jax.block_until_ready(out)

    ref = _reference_forward(x, w_ih, w_hh, b_ih, b_hh, w_lin, b_lin)
    assert out.shape == (B, O)
    assert jnp.allclose(out, ref, atol=1e-5, rtol=1e-5), "Pallas output mismatch vs reference"
    assert jnp.allclose(jnp.sum(out, axis=1), 1.0, atol=1e-5), "softmax rows must sum to 1"

    print("KERNEL_OK")
</pallas_src>

<mosaic_0001>
module attributes {stable_mosaic.version = 11 : i64} {
  func.func @_lstm_kernel(%arg0: memref<8x8x16xf32, #tpu.memory_space<vmem>>, %arg1: memref<48x128xf32, #tpu.memory_space<vmem>>, %arg2: memref<1x128xf32, #tpu.memory_space<vmem>>, %arg3: memref<32x128xf32, #tpu.memory_space<vmem>>, %arg4: memref<1x128xf32, #tpu.memory_space<vmem>>, %arg5: memref<8x128xf32, #tpu.memory_space<vmem>>, %arg6: memref<8x48xf32, #tpu.memory_space<vmem>>, %arg7: memref<8x32xf32, #tpu.memory_space<vmem>>) attributes {dimension_semantics = [], scalar_prefetch = 0 : i64, scratch_operands = 2 : i64, tpu.core_type = #tpu.core_type<tc>} {
    %cst = arith.constant 0.000000e+00 : f32
    %0 = vector.broadcast %cst : f32 to vector<8x48xf32>
    %c0 = arith.constant 0 : index
    %c0_0 = arith.constant 0 : index
    %1 = vector.load %arg6[%c0, %c0_0] : memref<8x48xf32, #tpu.memory_space<vmem>>, vector<8x48xf32>
    tpu.vector_store %arg6[%c0, %c0_0], %0 {strides = array<i32>} : memref<8x48xf32, #tpu.memory_space<vmem>>, vector<8x48xf32>,
    %cst_1 = arith.constant 0.000000e+00 : f32
    %2 = vector.broadcast %cst_1 : f32 to vector<8x32xf32>
    %c0_2 = arith.constant 0 : index
    %c0_3 = arith.constant 0 : index
    %3 = vector.load %arg7[%c0_2, %c0_3] : memref<8x32xf32, #tpu.memory_space<vmem>>, vector<8x32xf32>
    tpu.vector_store %arg7[%c0_2, %c0_3], %2 {strides = array<i32>} : memref<8x32xf32, #tpu.memory_space<vmem>>, vector<8x32xf32>,
    %c0_i32 = arith.constant 0 : i32
    %4 = arith.index_cast %c0_i32 : i32 to index
    %c0_4 = arith.constant 0 : index
    %c0_5 = arith.constant 0 : index
    %5 = vector.load %arg0[%4, %c0_4, %c0_5] : memref<8x8x16xf32, #tpu.memory_space<vmem>>, vector<1x8x16xf32>
    %6 = vector.shape_cast %5 : vector<1x8x16xf32> to vector<8x16xf32>
    %c0_6 = arith.constant 0 : index
    %c0_7 = arith.constant 0 : index
    %7 = vector.load %arg6[%c0_6, %c0_7] : memref<8x48xf32, #tpu.memory_space<vmem>>, vector<8x16xf32>
    tpu.vector_store %arg6[%c0_6, %c0_7], %6 {strides = array<i32>} : memref<8x48xf32, #tpu.memory_space<vmem>>, vector<8x16xf32>,
    %c0_8 = arith.constant 0 : index
    %c0_9 = arith.constant 0 : index
    %8 = vector.load %arg6[%c0_8, %c0_9] : memref<8x48xf32, #tpu.memory_space<vmem>>, vector<8x48xf32>
    %c0_10 = arith.constant 0 : index
    %c0_11 = arith.constant 0 : index
    %9 = vector.load %arg1[%c0_10, %c0_11] : memref<48x128xf32, #tpu.memory_space<vmem>>, vector<48x128xf32>
    %cst_12 = arith.constant dense<0.000000e+00> : vector<8x128xf32>
    %10 = tpu.matmul %8, %9, %cst_12 {dimension_numbers = #tpu.dot_dimension_numbers<[1], [0], [0], [1], [0, 0, 1, 1], [], []>} : vector<8x48xf32>, vector<48x128xf32>, vector<8x128xf32> -> vector<8x128xf32>
    %c0_13 = arith.constant 0 : index
    %c0_14 = arith.constant 0 : index
    %11 = vector.load %arg2[%c0_13, %c0_14] : memref<1x128xf32, #tpu.memory_space<vmem>>, vector<1x128xf32>
    %12 = vector.broadcast %11 : vector<1x128xf32> to vector<8x128xf32>
    %13 = arith.addf %10, %12 : vector<8x128xf32>
    %14 = arith.negf %13 : vector<8x128xf32>
    %15 = math.exp %14 : vector<8x128xf32>
    %cst_15 = arith.constant 1.000000e+00 : f32
    %16 = vector.broadcast %cst_15 : f32 to vector<8x128xf32>
    %17 = arith.addf %16, %15 : vector<8x128xf32>
    %18 = arith.divf %16, %17 : vector<8x128xf32>
    %19 = math.tanh %13 : vector<8x128xf32>
    %20 = vector.extract_strided_slice %18 {offsets = [0, 0], sizes = [8, 32], strides = [1, 1]} : vector<8x128xf32> to vector<8x32xf32>
    %21 = vector.extract_strided_slice %18 {offsets = [0, 32], sizes = [8, 32], strides = [1, 1]} : vector<8x128xf32> to vector<8x32xf32>
    %22 = vector.extract_strided_slice %19 {offsets = [0, 64], sizes = [8, 32], strides = [1, 1]} : vector<8x128xf32> to vector<8x32xf32>
    %23 = vector.extract_strided_slice %18 {offsets = [0, 96], sizes = [8, 32], strides = [1, 1]} : vector<8x128xf32> to vector<8x32xf32>
    %c0_16 = arith.constant 0 : index
    %c0_17 = arith.constant 0 : index
    %24 = vector.load %arg7[%c0_16, %c0_17] : memref<8x32xf32, #tpu.memory_space<vmem>>, vector<8x32xf32>
    %25 = arith.mulf %21, %24 : vector<8x32xf32>
    %26 = arith.mulf %20, %22 : vector<8x32xf32>
    %27 = arith.addf %25, %26 : vector<8x32xf32>
    %c0_18 = arith.constant 0 : index
    %c0_19 = arith.constant 0 : index
    %28 = vector.load %arg7[%c0_18, %c0_19] : memref<8x32xf32, #tpu.memory_space<vmem>>, vector<8x32xf32>
    tpu.vector_store %arg7[%c0_18, %c0_19], %27 {strides = array<i32>} : memref<8x32xf32, #tpu.memory_space<vmem>>, vector<8x32xf32>,
    %29 = math.tanh %27 : vector<8x32xf32>
    %30 = arith.mulf %23, %29 : vector<8x32xf32>
    %c0_20 = arith.constant 0 : index
    %c16 = arith.constant 16 : index
    %31 = vector.load %arg6[%c0_20, %c16] : memref<8x48xf32, #tpu.memory_space<vmem>>, vector<8x32xf32>
    tpu.vector_store %arg6[%c0_20, %c16], %30 {strides = array<i32>} : memref<8x48xf32, #tpu.memory_space<vmem>>, vector<8x32xf32>,
    %c1_i32 = arith.constant 1 : i32
    %32 = arith.index_cast %c1_i32 : i32 to index
    %c0_21 = arith.constant 0 : index
    %c0_22 = arith.constant 0 : index
    %33 = vector.load %arg0[%32, %c0_21, %c0_22] : memref<8x8x16xf32, #tpu.memory_space<vmem>>, vector<1x8x16xf32>
    %34 = vector.shape_cast %33 : vector<1x8x16xf32> to vector<8x16xf32>
    %c0_23 = arith.constant 0 : index
    %c0_24 = arith.constant 0 : index
    %35 = vector.load %arg6[%c0_23, %c0_24] : memref<8x48xf32, #tpu.memory_space<vmem>>, vector<8x16xf32>
    tpu.vector_store %arg6[%c0_23, %c0_24], %34 {strides = array<i32>} : memref<8x48xf32, #tpu.memory_space<vmem>>, vector<8x16xf32>,
    %c0_25 = arith.constant 0 : index
    %c0_26 = arith.constant 0 : index
    %36 = vector.load %arg6[%c0_25, %c0_26] : memref<8x48xf32, #tpu.memory_space<vmem>>, vector<8x48xf32>
    %c0_27 = arith.constant 0 : index
    %c0_28 = arith.constant 0 : index
    %37 = vector.load %arg1[%c0_27, %c0_28] : memref<48x128xf32, #tpu.memory_space<vmem>>, vector<48x128xf32>
    %cst_29 = arith.constant dense<0.000000e+00> : vector<8x128xf32>
    %38 = tpu.matmul %36, %37, %cst_29 {dimension_numbers = #tpu.dot_dimension_numbers<[1], [0], [0], [1], [0, 0, 1, 1], [], []>} : vector<8x48xf32>, vector<48x128xf32>, vector<8x128xf32> -> vector<8x128xf32>
    %c0_30 = arith.constant 0 : index
    %c0_31 = arith.constant 0 : index
    %39 = vector.load %arg2[%c0_30, %c0_31] : memref<1x128xf32, #tpu.memory_space<vmem>>, vector<1x128xf32>
    %40 = vector.broadcast %39 : vector<1x128xf32> to vector<8x128xf32>
    %41 = arith.addf %38, %40 : vector<8x128xf32>
    %42 = arith.negf %41 : vector<8x128xf32>
    %43 = math.exp %42 : vector<8x128xf32>
    %cst_32 = arith.constant 1.000000e+00 : f32
    %44 = vector.broadcast %cst_32 : f32 to vector<8x128xf32>
    %45 = arith.addf %44, %43 : vector<8x128xf32>
    %46 = arith.divf %44, %45 : vector<8x128xf32>
    %47 = math.tanh %41 : vector<8x128xf32>
    %48 = vector.extract_strided_slice %46 {offsets = [0, 0], sizes = [8, 32], strides = [1, 1]} : vector<8x128xf32> to vector<8x32xf32>
    %49 = vector.extract_strided_slice %46 {offsets = [0, 32], sizes = [8, 32], strides = [1, 1]} : vector<8x128xf32> to vector<8x32xf32>
    %50 = vector.extract_strided_slice %47 {offsets = [0, 64], sizes = [8, 32], strides = [1, 1]} : vector<8x128xf32> to vector<8x32xf32>
    %51 = vector.extract_strided_slice %46 {offsets = [0, 96], sizes = [8, 32], strides = [1, 1]} : vector<8x128xf32> to vector<8x32xf32>
    %c0_33 = arith.constant 0 : index
    %c0_34 = arith.constant 0 : index
    %52 = vector.load %arg7[%c0_33, %c0_34] : memref<8x32xf32, #tpu.memory_space<vmem>>, vector<8x32xf32>
    %53 = arith.mulf %49, %52 : vector<8x32xf32>
    %54 = arith.mulf %48, %50 : vector<8x32xf32>
    %55 = arith.addf %53, %54 : vector<8x32xf32>
    %c0_35 = arith.constant 0 : index
    %c0_36 = arith.constant 0 : index
    %56 = vector.load %arg7[%c0_35, %c0_36] : memref<8x32xf32, #tpu.memory_space<vmem>>, vector<8x32xf32>
    tpu.vector_store %arg7[%c0_35, %c0_36], %55 {strides = array<i32>} : memref<8x32xf32, #tpu.memory_space<vmem>>, vector<8x32xf32>,
    %57 = math.tanh %55 : vector<8x32xf32>
    %58 = arith.mulf %51, %57 : vector<8x32xf32>
    %c0_37 = arith.constant 0 : index
    %c16_38 = arith.constant 16 : index
    %59 = vector.load %arg6[%c0_37, %c16_38] : memref<8x48xf32, #tpu.memory_space<vmem>>, vector<8x32xf32>
    tpu.vector_store %arg6[%c0_37, %c16_38], %58 {strides = array<i32>} : memref<8x48xf32, #tpu.memory_space<vmem>>, vector<8x32xf32>,
    %c2_i32 = arith.constant 2 : i32
    %60 = arith.index_cast %c2_i32 : i32 to index
    %c0_39 = arith.constant 0 : index
    %c0_40 = arith.constant 0 : index
    %61 = vector.load %arg0[%60, %c0_39, %c0_40] : memref<8x8x16xf32, #tpu.memory_space<vmem>>, vector<1x8x16xf32>
    %62 = vector.shape_cast %61 : vector<1x8x16xf32> to vector<8x16xf32>
    %c0_41 = arith.constant 0 : index
    %c0_42 = arith.constant 0 : index
    %63 = vector.load %arg6[%c0_41, %c0_42] : memref<8x48xf32, #tpu.memory_space<vmem>>, vector<8x16xf32>
    tpu.vector_store %arg6[%c0_41, %c0_42], %62 {strides = array<i32>} : memref<8x48xf32, #tpu.memory_space<vmem>>, vector<8x16xf32>,
    %c0_43 = arith.constant 0 : index
    %c0_44 = arith.constant 0 : index
    %64 = vector.load %arg6[%c0_43, %c0_44] : memref<8x48xf32, #tpu.memory_space<vmem>>, vector<8x48xf32>
    %c0_45 = arith.constant 0 : index
    %c0_46 = arith.constant 0 : index
    %65 = vector.load %arg1[%c0_45, %c0_46] : memref<48x128xf32, #tpu.memory_space<vmem>>, vector<48x128xf32>
    %cst_47 = arith.constant dense<0.000000e+00> : vector<8x128xf32>
    %66 = tpu.matmul %64, %65, %cst_47 {dimension_numbers = #tpu.dot_dimension_numbers<[1], [0], [0], [1], [0, 0, 1, 1], [], []>} : vector<8x48xf32>, vector<48x128xf32>, vector<8x128xf32> -> vector<8x128xf32>
    %c0_48 = arith.constant 0 : index
    %c0_49 = arith.constant 0 : index
    %67 = vector.load %arg2[%c0_48, %c0_49] : memref<1x128xf32, #tpu.memory_space<vmem>>, vector<1x128xf32>
    %68 = vector.broadcast %67 : vector<1x128xf32> to vector<8x128xf32>
    %69 = arith.addf %66, %68 : vector<8x128xf32>
    %70 = arith.negf %69 : vector<8x128xf32>
    %71 = math.exp %70 : vector<8x128xf32>
    %cst_50 = arith.constant 1.000000e+00 : f32
    %72 = vector.broadcast %cst_50 : f32 to vector<8x128xf32>
    %73 = arith.addf %72, %71 : vector<8x128xf32>
    %74 = arith.divf %72, %73 : vector<8x128xf32>
    %75 = math.tanh %69 : vector<8x128xf32>
    %76 = vector.extract_strided_slice %74 {offsets = [0, 0], sizes = [8, 32], strides = [1, 1]} : vector<8x128xf32> to vector<8x32xf32>
    %77 = vector.extract_strided_slice %74 {offsets = [0, 32], sizes = [8, 32], strides = [1, 1]} : vector<8x128xf32> to vector<8x32xf32>
    %78 = vector.extract_strided_slice %75 {offsets = [0, 64], sizes = [8, 32], strides = [1, 1]} : vector<8x128xf32> to vector<8x32xf32>
    %79 = vector.extract_strided_slice %74 {offsets = [0, 96], sizes = [8, 32], strides = [1, 1]} : vector<8x128xf32> to vector<8x32xf32>
    %c0_51 = arith.constant 0 : index
    %c0_52 = arith.constant 0 : index
    %80 = vector.load %arg7[%c0_51, %c0_52] : memref<8x32xf32, #tpu.memory_space<vmem>>, vector<8x32xf32>
    %81 = arith.mulf %77, %80 : vector<8x32xf32>
    %82 = arith.mulf %76, %78 : vector<8x32xf32>
    %83 = arith.addf %81, %82 : vector<8x32xf32>
    %c0_53 = arith.constant 0 : index
    %c0_54 = arith.constant 0 : index
    %84 = vector.load %arg7[%c0_53, %c0_54] : memref<8x32xf32, #tpu.memory_space<vmem>>, vector<8x32xf32>
    tpu.vector_store %arg7[%c0_53, %c0_54], %83 {strides = array<i32>} : memref<8x32xf32, #tpu.memory_space<vmem>>, vector<8x32xf32>,
    %85 = math.tanh %83 : vector<8x32xf32>
    %86 = arith.mulf %79, %85 : vector<8x32xf32>
    %c0_55 = arith.constant 0 : index
    %c16_56 = arith.constant 16 : index
    %87 = vector.load %arg6[%c0_55, %c16_56] : memref<8x48xf32, #tpu.memory_space<vmem>>, vector<8x32xf32>
    tpu.vector_store %arg6[%c0_55, %c16_56], %86 {strides = array<i32>} : memref<8x48xf32, #tpu.memory_space<vmem>>, vector<8x32xf32>,
    %c3_i32 = arith.constant 3 : i32
    %88 = arith.index_cast %c3_i32 : i32 to index
    %c0_57 = arith.constant 0 : index
    %c0_58 = arith.constant 0 : index
    %89 = vector.load %arg0[%88, %c0_57, %c0_58] : memref<8x8x16xf32, #tpu.memory_space<vmem>>, vector<1x8x16xf32>
    %90 = vector.shape_cast %89 : vector<1x8x16xf32> to vector<8x16xf32>
    %c0_59 = arith.constant 0 : index
    %c0_60 = arith.constant 0 : index
    %91 = vector.load %arg6[%c0_59, %c0_60] : memref<8x48xf32, #tpu.memory_space<vmem>>, vector<8x16xf32>
    tpu.vector_store %arg6[%c0_59, %c0_60], %90 {strides = array<i32>} : memref<8x48xf32, #tpu.memory_space<vmem>>, vector<8x16xf32>,
    %c0_61 = arith.constant 0 : index
    %c0_62 = arith.constant 0 : index
    %92 = vector.load %arg6[%c0_61, %c0_62] : memref<8x48xf32, #tpu.memory_space<vmem>>, vector<8x48xf32>
    %c0_63 = arith.constant 0 : index
    %c0_64 = arith.constant 0 : index
    %93 = vector.load %arg1[%c0_63, %c0_64] : memref<48x128xf32, #tpu.memory_space<vmem>>, vector<48x128xf32>
    %cst_65 = arith.constant dense<0.000000e+00> : vector<8x128xf32>
    %94 = tpu.matmul %92, %93, %cst_65 {dimension_numbers = #tpu.dot_dimension_numbers<[1], [0], [0], [1], [0, 0, 1, 1], [], []>} : vector<8x48xf32>, vector<48x128xf32>, vector<8x128xf32> -> vector<8x128xf32>
    %c0_66 = arith.constant 0 : index
    %c0_67 = arith.constant 0 : index
    %95 = vector.load %arg2[%c0_66, %c0_67] : memref<1x128xf32, #tpu.memory_space<vmem>>, vector<1x128xf32>
    %96 = vector.broadcast %95 : vector<1x128xf32> to vector<8x128xf32>
    %97 = arith.addf %94, %96 : vector<8x128xf32>
    %98 = arith.negf %97 : vector<8x128xf32>
    %99 = math.exp %98 : vector<8x128xf32>
    %cst_68 = arith.constant 1.000000e+00 : f32
    %100 = vector.broadcast %cst_68 : f32 to vector<8x128xf32>
    %101 = arith.addf %100, %99 : vector<8x128xf32>
    %102 = arith.divf %100, %101 : vector<8x128xf32>
    %103 = math.tanh %97 : vector<8x128xf32>
    %104 = vector.extract_strided_slice %102 {offsets = [0, 0], sizes = [8, 32], strides = [1, 1]} : vector<8x128xf32> to vector<8x32xf32>
    %105 = vector.extract_strided_slice %102 {offsets = [0, 32], sizes = [8, 32], strides = [1, 1]} : vector<8x128xf32> to vector<8x32xf32>
    %106 = vector.extract_strided_slice %103 {offsets = [0, 64], sizes = [8, 32], strides = [1, 1]} : vector<8x128xf32> to vector<8x32xf32>
    %107 = vector.extract_strided_slice %102 {offsets = [0, 96], sizes = [8, 32], strides = [1, 1]} : vector<8x128xf32> to vector<8x32xf32>
    %c0_69 = arith.constant 0 : index
    %c0_70 = arith.constant 0 : index
    %108 = vector.load %arg7[%c0_69, %c0_70] : memref<8x32xf32, #tpu.memory_space<vmem>>, vector<8x32xf32>
    %109 = arith.mulf %105, %108 : vector<8x32xf32>
    %110 = arith.mulf %104, %106 : vector<8x32xf32>
    %111 = arith.addf %109, %110 : vector<8x32xf32>
    %c0_71 = arith.constant 0 : index
    %c0_72 = arith.constant 0 : index
    %112 = vector.load %arg7[%c0_71, %c0_72] : memref<8x32xf32, #tpu.memory_space<vmem>>, vector<8x32xf32>
    tpu.vector_store %arg7[%c0_71, %c0_72], %111 {strides = array<i32>} : memref<8x32xf32, #tpu.memory_space<vmem>>, vector<8x32xf32>,
    %113 = math.tanh %111 : vector<8x32xf32>
    %114 = arith.mulf %107, %113 : vector<8x32xf32>
    %c0_73 = arith.constant 0 : index
    %c16_74 = arith.constant 16 : index
    %115 = vector.load %arg6[%c0_73, %c16_74] : memref<8x48xf32, #tpu.memory_space<vmem>>, vector<8x32xf32>
    tpu.vector_store %arg6[%c0_73, %c16_74], %114 {strides = array<i32>} : memref<8x48xf32, #tpu.memory_space<vmem>>, vector<8x32xf32>,
    %c4_i32 = arith.constant 4 : i32
    %116 = arith.index_cast %c4_i32 : i32 to index
    %c0_75 = arith.constant 0 : index
    %c0_76 = arith.constant 0 : index
    %117 = vector.load %arg0[%116, %c0_75, %c0_76] : memref<8x8x16xf32, #tpu.memory_space<vmem>>, vector<1x8x16xf32>
    %118 = vector.shape_cast %117 : vector<1x8x16xf32> to vector<8x16xf32>
    %c0_77 = arith.constant 0 : index
    %c0_78 = arith.constant 0 : index
    %119 = vector.load %arg6[%c0_77, %c0_78] : memref<8x48xf32, #tpu.memory_space<vmem>>, vector<8x16xf32>
    tpu.vector_store %arg6[%c0_77, %c0_78], %118 {strides = array<i32>} : memref<8x48xf32, #tpu.memory_space<vmem>>, vector<8x16xf32>,
    %c0_79 = arith.constant 0 : index
    %c0_80 = arith.constant 0 : index
    %120 = vector.load %arg6[%c0_79, %c0_80] : memref<8x48xf32, #tpu.memory_space<vmem>>, vector<8x48xf32>
    %c0_81 = arith.constant 0 : index
    %c0_82 = arith.constant 0 : index
    %121 = vector.load %arg1[%c0_81, %c0_82] : memref<48x128xf32, #tpu.memory_space<vmem>>, vector<48x128xf32>
    %cst_83 = arith.constant dense<0.000000e+00> : vector<8x128xf32>
    %122 = tpu.matmul %120, %121, %cst_83 {dimension_numbers = #tpu.dot_dimension_numbers<[1], [0], [0], [1], [0, 0, 1, 1], [], []>} : vector<8x48xf32>, vector<48x128xf32>, vector<8x128xf32> -> vector<8x128xf32>
    %c0_84 = arith.constant 0 : index
    %c0_85 = arith.constant 0 : index
    %123 = vector.load %arg2[%c0_84, %c0_85] : memref<1x128xf32, #tpu.memory_space<vmem>>, vector<1x128xf32>
    %124 = vector.broadcast %123 : vector<1x128xf32> to vector<8x128xf32>
    %125 = arith.addf %122, %124 : vector<8x128xf32>
    %126 = arith.negf %125 : vector<8x128xf32>
    %127 = math.exp %126 : vector<8x128xf32>
    %cst_86 = arith.constant 1.000000e+00 : f32
    %128 = vector.broadcast %cst_86 : f32 to vector<8x128xf32>
    %129 = arith.addf %128, %127 : vector<8x128xf32>
    %130 = arith.divf %128, %129 : vector<8x128xf32>
    %131 = math.tanh %125 : vector<8x128xf32>
    %132 = vector.extract_strided_slice %130 {offsets = [0, 0], sizes = [8, 32], strides = [1, 1]} : vector<8x128xf32> to vector<8x32xf32>
    %133 = vector.extract_strided_slice %130 {offsets = [0, 32], sizes = [8, 32], strides = [1, 1]} : vector<8x128xf32> to vector<8x32xf32>
    %134 = vector.extract_strided_slice %131 {offsets = [0, 64], sizes = [8, 32], strides = [1, 1]} : vector<8x128xf32> to vector<8x32xf32>
    %135 = vector.extract_strided_slice %130 {offsets = [0, 96], sizes = [8, 32], strides = [1, 1]} : vector<8x128xf32> to vector<8x32xf32>
    %c0_87 = arith.constant 0 : index
    %c0_88 = arith.constant 0 : index
    %136 = vector.load %arg7[%c0_87, %c0_88] : memref<8x32xf32, #tpu.memory_space<vmem>>, vector<8x32xf32>
    %137 = arith.mulf %133, %136 : vector<8x32xf32>
    %138 = arith.mulf %132, %134 : vector<8x32xf32>
    %139 = arith.addf %137, %138 : vector<8x32xf32>
    %c0_89 = arith.constant 0 : index
    %c0_90 = arith.constant 0 : index
    %140 = vector.load %arg7[%c0_89, %c0_90] : memref<8x32xf32, #tpu.memory_space<vmem>>, vector<8x32xf32>
    tpu.vector_store %arg7[%c0_89, %c0_90], %139 {strides = array<i32>} : memref<8x32xf32, #tpu.memory_space<vmem>>, vector<8x32xf32>,
    %141 = math.tanh %139 : vector<8x32xf32>
    %142 = arith.mulf %135, %141 : vector<8x32xf32>
    %c0_91 = arith.constant 0 : index
    %c16_92 = arith.constant 16 : index
    %143 = vector.load %arg6[%c0_91, %c16_92] : memref<8x48xf32, #tpu.memory_space<vmem>>, vector<8x32xf32>
    tpu.vector_store %arg6[%c0_91, %c16_92], %142 {strides = array<i32>} : memref<8x48xf32, #tpu.memory_space<vmem>>, vector<8x32xf32>,
    %c5_i32 = arith.constant 5 : i32
    %144 = arith.index_cast %c5_i32 : i32 to index
    %c0_93 = arith.constant 0 : index
    %c0_94 = arith.constant 0 : index
    %145 = vector.load %arg0[%144, %c0_93, %c0_94] : memref<8x8x16xf32, #tpu.memory_space<vmem>>, vector<1x8x16xf32>
    %146 = vector.shape_cast %145 : vector<1x8x16xf32> to vector<8x16xf32>
    %c0_95 = arith.constant 0 : index
    %c0_96 = arith.constant 0 : index
    %147 = vector.load %arg6[%c0_95, %c0_96] : memref<8x48xf32, #tpu.memory_space<vmem>>, vector<8x16xf32>
    tpu.vector_store %arg6[%c0_95, %c0_96], %146 {strides = array<i32>} : memref<8x48xf32, #tpu.memory_space<vmem>>, vector<8x16xf32>,
    %c0_97 = arith.constant 0 : index
    %c0_98 = arith.constant 0 : index
    %148 = vector.load %arg6[%c0_97, %c0_98] : memref<8x48xf32, #tpu.memory_space<vmem>>, vector<8x48xf32>
    %c0_99 = arith.constant 0 : index
    %c0_100 = arith.constant 0 : index
    %149 = vector.load %arg1[%c0_99, %c0_100] : memref<48x128xf32, #tpu.memory_space<vmem>>, vector<48x128xf32>
    %cst_101 = arith.constant dense<0.000000e+00> : vector<8x128xf32>
    %150 = tpu.matmul %148, %149, %cst_101 {dimension_numbers = #tpu.dot_dimension_numbers<[1], [0], [0], [1], [0, 0, 1, 1], [], []>} : vector<8x48xf32>, vector<48x128xf32>, vector<8x128xf32> -> vector<8x128xf32>
    %c0_102 = arith.constant 0 : index
    %c0_103 = arith.constant 0 : index
    %151 = vector.load %arg2[%c0_102, %c0_103] : memref<1x128xf32, #tpu.memory_space<vmem>>, vector<1x128xf32>
    %152 = vector.broadcast %151 : vector<1x128xf32> to vector<8x128xf32>
    %153 = arith.addf %150, %152 : vector<8x128xf32>
    %154 = arith.negf %153 : vector<8x128xf32>
    %155 = math.exp %154 : vector<8x128xf32>
    %cst_104 = arith.constant 1.000000e+00 : f32
    %156 = vector.broadcast %cst_104 : f32 to vector<8x128xf32>
    %157 = arith.addf %156, %155 : vector<8x128xf32>
    %158 = arith.divf %156, %157 : vector<8x128xf32>
    %159 = math.tanh %153 : vector<8x128xf32>
    %160 = vector.extract_strided_slice %158 {offsets = [0, 0], sizes = [8, 32], strides = [1, 1]} : vector<8x128xf32> to vector<8x32xf32>
    %161 = vector.extract_strided_slice %158 {offsets = [0, 32], sizes = [8, 32], strides = [1, 1]} : vector<8x128xf32> to vector<8x32xf32>
    %162 = vector.extract_strided_slice %159 {offsets = [0, 64], sizes = [8, 32], strides = [1, 1]} : vector<8x128xf32> to vector<8x32xf32>
    %163 = vector.extract_strided_slice %158 {offsets = [0, 96], sizes = [8, 32], strides = [1, 1]} : vector<8x128xf32> to vector<8x32xf32>
    %c0_105 = arith.constant 0 : index
    %c0_106 = arith.constant 0 : index
    %164 = vector.load %arg7[%c0_105, %c0_106] : memref<8x32xf32, #tpu.memory_space<vmem>>, vector<8x32xf32>
    %165 = arith.mulf %161, %164 : vector<8x32xf32>
    %166 = arith.mulf %160, %162 : vector<8x32xf32>
    %167 = arith.addf %165, %166 : vector<8x32xf32>
    %c0_107 = arith.constant 0 : index
    %c0_108 = arith.constant 0 : index
    %168 = vector.load %arg7[%c0_107, %c0_108] : memref<8x32xf32, #tpu.memory_space<vmem>>, vector<8x32xf32>
    tpu.vector_store %arg7[%c0_107, %c0_108], %167 {strides = array<i32>} : memref<8x32xf32, #tpu.memory_space<vmem>>, vector<8x32xf32>,
    %169 = math.tanh %167 : vector<8x32xf32>
    %170 = arith.mulf %163, %169 : vector<8x32xf32>
    %c0_109 = arith.constant 0 : index
    %c16_110 = arith.constant 16 : index
    %171 = vector.load %arg6[%c0_109, %c16_110] : memref<8x48xf32, #tpu.memory_space<vmem>>, vector<8x32xf32>
    tpu.vector_store %arg6[%c0_109, %c16_110], %170 {strides = array<i32>} : memref<8x48xf32, #tpu.memory_space<vmem>>, vector<8x32xf32>,
    %c6_i32 = arith.constant 6 : i32
    %172 = arith.index_cast %c6_i32 : i32 to index
    %c0_111 = arith.constant 0 : index
    %c0_112 = arith.constant 0 : index
    %173 = vector.load %arg0[%172, %c0_111, %c0_112] : memref<8x8x16xf32, #tpu.memory_space<vmem>>, vector<1x8x16xf32>
    %174 = vector.shape_cast %173 : vector<1x8x16xf32> to vector<8x16xf32>
    %c0_113 = arith.constant 0 : index
    %c0_114 = arith.constant 0 : index
    %175 = vector.load %arg6[%c0_113, %c0_114] : memref<8x48xf32, #tpu.memory_space<vmem>>, vector<8x16xf32>
    tpu.vector_store %arg6[%c0_113, %c0_114], %174 {strides = array<i32>} : memref<8x48xf32, #tpu.memory_space<vmem>>, vector<8x16xf32>,
    %c0_115 = arith.constant 0 : index
    %c0_116 = arith.constant 0 : index
    %176 = vector.load %arg6[%c0_115, %c0_116] : memref<8x48xf32, #tpu.memory_space<vmem>>, vector<8x48xf32>
    %c0_117 = arith.constant 0 : index
    %c0_118 = arith.constant 0 : index
    %177 = vector.load %arg1[%c0_117, %c0_118] : memref<48x128xf32, #tpu.memory_space<vmem>>, vector<48x128xf32>
    %cst_119 = arith.constant dense<0.000000e+00> : vector<8x128xf32>
    %178 = tpu.matmul %176, %177, %cst_119 {dimension_numbers = #tpu.dot_dimension_numbers<[1], [0], [0], [1], [0, 0, 1, 1], [], []>} : vector<8x48xf32>, vector<48x128xf32>, vector<8x128xf32> -> vector<8x128xf32>
    %c0_120 = arith.constant 0 : index
    %c0_121 = arith.constant 0 : index
    %179 = vector.load %arg2[%c0_120, %c0_121] : memref<1x128xf32, #tpu.memory_space<vmem>>, vector<1x128xf32>
    %180 = vector.broadcast %179 : vector<1x128xf32> to vector<8x128xf32>
    %181 = arith.addf %178, %180 : vector<8x128xf32>
    %182 = arith.negf %181 : vector<8x128xf32>
    %183 = math.exp %182 : vector<8x128xf32>
    %cst_122 = arith.constant 1.000000e+00 : f32
    %184 = vector.broadcast %cst_122 : f32 to vector<8x128xf32>
    %185 = arith.addf %184, %183 : vector<8x128xf32>
    %186 = arith.divf %184, %185 : vector<8x128xf32>
    %187 = math.tanh %181 : vector<8x128xf32>
    %188 = vector.extract_strided_slice %186 {offsets = [0, 0], sizes = [8, 32], strides = [1, 1]} : vector<8x128xf32> to vector<8x32xf32>
    %189 = vector.extract_strided_slice %186 {offsets = [0, 32], sizes = [8, 32], strides = [1, 1]} : vector<8x128xf32> to vector<8x32xf32>
    %190 = vector.extract_strided_slice %187 {offsets = [0, 64], sizes = [8, 32], strides = [1, 1]} : vector<8x128xf32> to vector<8x32xf32>
    %191 = vector.extract_strided_slice %186 {offsets = [0, 96], sizes = [8, 32], strides = [1, 1]} : vector<8x128xf32> to vector<8x32xf32>
    %c0_123 = arith.constant 0 : index
    %c0_124 = arith.constant 0 : index
    %192 = vector.load %arg7[%c0_123, %c0_124] : memref<8x32xf32, #tpu.memory_space<vmem>>, vector<8x32xf32>
    %193 = arith.mulf %189, %192 : vector<8x32xf32>
    %194 = arith.mulf %188, %190 : vector<8x32xf32>
    %195 = arith.addf %193, %194 : vector<8x32xf32>
    %c0_125 = arith.constant 0 : index
    %c0_126 = arith.constant 0 : index
    %196 = vector.load %arg7[%c0_125, %c0_126] : memref<8x32xf32, #tpu.memory_space<vmem>>, vector<8x32xf32>
    tpu.vector_store %arg7[%c0_125, %c0_126], %195 {strides = array<i32>} : memref<8x32xf32, #tpu.memory_space<vmem>>, vector<8x32xf32>,
    %197 = math.tanh %195 : vector<8x32xf32>
    %198 = arith.mulf %191, %197 : vector<8x32xf32>
    %c0_127 = arith.constant 0 : index
    %c16_128 = arith.constant 16 : index
    %199 = vector.load %arg6[%c0_127, %c16_128] : memref<8x48xf32, #tpu.memory_space<vmem>>, vector<8x32xf32>
    tpu.vector_store %arg6[%c0_127, %c16_128], %198 {strides = array<i32>} : memref<8x48xf32, #tpu.memory_space<vmem>>, vector<8x32xf32>,
    %c7_i32 = arith.constant 7 : i32
    %200 = arith.index_cast %c7_i32 : i32 to index
    %c0_129 = arith.constant 0 : index
    %c0_130 = arith.constant 0 : index
    %201 = vector.load %arg0[%200, %c0_129, %c0_130] : memref<8x8x16xf32, #tpu.memory_space<vmem>>, vector<1x8x16xf32>
    %202 = vector.shape_cast %201 : vector<1x8x16xf32> to vector<8x16xf32>
    %c0_131 = arith.constant 0 : index
    %c0_132 = arith.constant 0 : index
    %203 = vector.load %arg6[%c0_131, %c0_132] : memref<8x48xf32, #tpu.memory_space<vmem>>, vector<8x16xf32>
    tpu.vector_store %arg6[%c0_131, %c0_132], %202 {strides = array<i32>} : memref<8x48xf32, #tpu.memory_space<vmem>>, vector<8x16xf32>,
    %c0_133 = arith.constant 0 : index
    %c0_134 = arith.constant 0 : index
    %204 = vector.load %arg6[%c0_133, %c0_134] : memref<8x48xf32, #tpu.memory_space<vmem>>, vector<8x48xf32>
    %c0_135 = arith.constant 0 : index
    %c0_136 = arith.constant 0 : index
    %205 = vector.load %arg1[%c0_135, %c0_136] : memref<48x128xf32, #tpu.memory_space<vmem>>, vector<48x128xf32>
    %cst_137 = arith.constant dense<0.000000e+00> : vector<8x128xf32>
    %206 = tpu.matmul %204, %205, %cst_137 {dimension_numbers = #tpu.dot_dimension_numbers<[1], [0], [0], [1], [0, 0, 1, 1], [], []>} : vector<8x48xf32>, vector<48x128xf32>, vector<8x128xf32> -> vector<8x128xf32>
    %c0_138 = arith.constant 0 : index
    %c0_139 = arith.constant 0 : index
    %207 = vector.load %arg2[%c0_138, %c0_139] : memref<1x128xf32, #tpu.memory_space<vmem>>, vector<1x128xf32>
    %208 = vector.broadcast %207 : vector<1x128xf32> to vector<8x128xf32>
    %209 = arith.addf %206, %208 : vector<8x128xf32>
    %210 = arith.negf %209 : vector<8x128xf32>
    %211 = math.exp %210 : vector<8x128xf32>
    %cst_140 = arith.constant 1.000000e+00 : f32
    %212 = vector.broadcast %cst_140 : f32 to vector<8x128xf32>
    %213 = arith.addf %212, %211 : vector<8x128xf32>
    %214 = arith.divf %212, %213 : vector<8x128xf32>
    %215 = math.tanh %209 : vector<8x128xf32>
    %216 = vector.extract_strided_slice %214 {offsets = [0, 0], sizes = [8, 32], strides = [1, 1]} : vector<8x128xf32> to vector<8x32xf32>
    %217 = vector.extract_strided_slice %214 {offsets = [0, 32], sizes = [8, 32], strides = [1, 1]} : vector<8x128xf32> to vector<8x32xf32>
    %218 = vector.extract_strided_slice %215 {offsets = [0, 64], sizes = [8, 32], strides = [1, 1]} : vector<8x128xf32> to vector<8x32xf32>
    %219 = vector.extract_strided_slice %214 {offsets = [0, 96], sizes = [8, 32], strides = [1, 1]} : vector<8x128xf32> to vector<8x32xf32>
    %c0_141 = arith.constant 0 : index
    %c0_142 = arith.constant 0 : index
    %220 = vector.load %arg7[%c0_141, %c0_142] : memref<8x32xf32, #tpu.memory_space<vmem>>, vector<8x32xf32>
    %221 = arith.mulf %217, %220 : vector<8x32xf32>
    %222 = arith.mulf %216, %218 : vector<8x32xf32>
    %223 = arith.addf %221, %222 : vector<8x32xf32>
    %c0_143 = arith.constant 0 : index
    %c0_144 = arith.constant 0 : index
    %224 = vector.load %arg7[%c0_143, %c0_144] : memref<8x32xf32, #tpu.memory_space<vmem>>, vector<8x32xf32>
    tpu.vector_store %arg7[%c0_143, %c0_144], %223 {strides = array<i32>} : memref<8x32xf32, #tpu.memory_space<vmem>>, vector<8x32xf32>,
    %225 = math.tanh %223 : vector<8x32xf32>
    %226 = arith.mulf %219, %225 : vector<8x32xf32>
    %c0_145 = arith.constant 0 : index
    %c16_146 = arith.constant 16 : index
    %227 = vector.load %arg6[%c0_145, %c16_146] : memref<8x48xf32, #tpu.memory_space<vmem>>, vector<8x32xf32>
    tpu.vector_store %arg6[%c0_145, %c16_146], %226 {strides = array<i32>} : memref<8x48xf32, #tpu.memory_space<vmem>>, vector<8x32xf32>,
    %c8_i32 = arith.constant 8 : i32
    %c0_147 = arith.constant 0 : index
    %c16_148 = arith.constant 16 : index
    %228 = vector.load %arg6[%c0_147, %c16_148] : memref<8x48xf32, #tpu.memory_space<vmem>>, vector<8x32xf32>
    %c0_149 = arith.constant 0 : index
    %c0_150 = arith.constant 0 : index
    %229 = vector.load %arg3[%c0_149, %c0_150] : memref<32x128xf32, #tpu.memory_space<vmem>>, vector<32x128xf32>
    %cst_151 = arith.constant dense<0.000000e+00> : vector<8x128xf32>
    %230 = tpu.matmul %228, %229, %cst_151 {dimension_numbers = #tpu.dot_dimension_numbers<[1], [0], [0], [1], [0, 0, 1, 1], [], []>} : vector<8x32xf32>, vector<32x128xf32>, vector<8x128xf32> -> vector<8x128xf32>
    %c0_152 = arith.constant 0 : index
    %c0_153 = arith.constant 0 : index
    %231 = vector.load %arg4[%c0_152, %c0_153] : memref<1x128xf32, #tpu.memory_space<vmem>>, vector<1x128xf32>
    %232 = vector.broadcast %231 : vector<1x128xf32> to vector<8x128xf32>
    %233 = arith.addf %230, %232 : vector<8x128xf32>
    %234 = tpu.iota {dimensions = array<i32: 1>} : vector<8x128xi32>
    %c4_i32_154 = arith.constant 4 : i32
    %235 = vector.broadcast %c4_i32_154 : i32 to vector<8x128xi32>
    %236 = arith.cmpi slt, %234, %235 : vector<8x128xi32>
    %cst_155 = arith.constant -1.000000e+30 : f32
    %237 = vector.broadcast %cst_155 : f32 to vector<8x128xf32>
    %238 = arith.select %236, %233, %237 : vector<8x128xi1>, vector<8x128xf32>
    %cst_156 = arith.constant dense<0xFF800000> : vector<8xf32>
    %239 = vector.multi_reduction <maximumf>, %238, %cst_156 [1] : vector<8x128xf32> to vector<8xf32>
    %240 = vector.shape_cast %239 : vector<8xf32> to vector<8x1xf32>
    %241 = vector.broadcast %240 : vector<8x1xf32> to vector<8x128xf32>
    %242 = arith.subf %238, %241 : vector<8x128xf32>
    %243 = math.exp %242 : vector<8x128xf32>
    %cst_157 = arith.constant 0.000000e+00 : f32
    %244 = vector.broadcast %cst_157 : f32 to vector<8x128xf32>
    %245 = arith.select %236, %243, %244 : vector<8x128xi1>, vector<8x128xf32>
    %cst_158 = arith.constant dense<0.000000e+00> : vector<8xf32>
    %246 = vector.multi_reduction <add>, %245, %cst_158 [1] : vector<8x128xf32> to vector<8xf32>
    %247 = vector.shape_cast %246 : vector<8xf32> to vector<8x1xf32>
    %248 = vector.broadcast %247 : vector<8x1xf32> to vector<8x128xf32>
    %249 = arith.divf %245, %248 : vector<8x128xf32>
    %c0_159 = arith.constant 0 : index
    %c0_160 = arith.constant 0 : index
    %250 = vector.load %arg5[%c0_159, %c0_160] : memref<8x128xf32, #tpu.memory_space<vmem>>, vector<8x128xf32>
    tpu.vector_store %arg5[%c0_159, %c0_160], %249 {strides = array<i32>} : memref<8x128xf32, #tpu.memory_space<vmem>>, vector<8x128xf32>,
    return
  }
}

</mosaic_0001>

<bundles_post_ra>
// kernel: tpu_custom_call.1
= control target key start
LH: loop header
LB: loop body
LE: loop exit
PB: predicated region body
PF: predicated region fallthrough
CT: control target
= control target key end

     0   :  { %10 = vsyncpa [#allocation5], 0  ;;  %s1888_s0 = inlined_call_operand.hbm [shape: f32[8,8,16], index: 0, kind: input, shape index: {}]   ;;  %s1889_s1 = inlined_call_operand.hbm [shape: f32[48,128], index: 1, kind: input, shape index: {}]   ;;  %s1890_s2 = inlined_call_operand.vmem [shape: f32[1,128], index: 2, kind: input, shape index: {}]   ;;  %s1891_s3 = inlined_call_operand.hbm [shape: f32[32,128], index: 3, kind: input, shape index: {}]   ;;  %s1892_s4 = inlined_call_operand.vmem [shape: f32[1,128], index: 4, kind: input, shape index: {}]   ;;  %s1893_s5 = inlined_call_operand.hbm [shape: f32[8,128], index: 5, kind: output, shape index: {}]  }
   0x1   :  { %11 = vsyncpa [#allocation8], 0 }
   0x2   :  { %12 = vsyncpa [#allocation6], 0  ;;  %s1602_s18 = smov [#allocation7]   ;;  %s1603_s20 = smov [#allocation4]  }
   0x3   :  { %s30_s19 = sshll.u32 %s1602_s18, 4  ;;  %s18_s21 = sshll.u32 %s1603_s20, 4  ;;  %s31_s19 = int_to_ptr.vmem [resolvable:$true] %s30_s19  ;;  %s19_s21 = int_to_ptr.vmem [resolvable:$true] %s18_s21 }
   0x4   :  { %s1524_s22 = scalar_lea.vmem %s31_s19, 768  ;;  %p1529_p1 = scmp.lt.s32.totalorder %s31_s19, %s31_s19 }
   0x5   :  { %p1525_p0 = scmp.ne.s32.totalorder %s31_s19, %s1524_s22  ;;  %p1530_p2 = scmp.lt.s32.totalorder %s1524_s22, %s1524_s22 }
   0x7   :  { %p1531_p3 = por %p1530_p2, %p1529_p1 }
   0x9   :  { %p1532_p4 = pnand %p1531_p3, %p1525_p0 }
   0xb   :  { %1535 = shalt.err (!%p1532_p4)
}
   0xc   :  { %s1604_s23 = smov 128   ;;  %s1605_s24 = smov 8  }
   0xd   :  { %36 = dma.hbm_to_vmem [thread:$0]  %s1889_s1, 768, %s31_s19, [#allocation8], %s1604_s23, %s1604_s23, %s1605_s24  }
   0xe   :  { %s1544_s27 = scalar_lea.vmem %s19_s21, 1024  ;;  %p1549_p6 = scmp.lt.s32.totalorder %s19_s21, %s19_s21 }
   0xf   :  { %p1545_p5 = scmp.ne.s32.totalorder %s19_s21, %s1544_s27  ;;  %p1550_p7 = scmp.lt.s32.totalorder %s1544_s27, %s1544_s27 }
  0x11   :  { %p1551_p8 = por %p1550_p7, %p1549_p6 }
  0x13   :  { %p1552_p9 = pnand %p1551_p8, %p1545_p5 }
  0x15   :  { %1555 = shalt.err (!%p1552_p9)
}
  0x16   :  { %24 = dma.hbm_to_vmem [thread:$0]  %s1888_s0, 1024, %s19_s21, [#allocation5], %s1604_s23, %s1604_s23, %s1605_s24  }
  0x17   :  { %s1606_s30 = smov [#allocation9]  }
  0x18   :  { %s44_s6 = sshll.u32 %s1606_s30, 4  ;;  %s45_s6 = int_to_ptr.vmem [resolvable:$true] %s44_s6 }
  0x19   :  { %s1564_s7 = scalar_lea.vmem %s45_s6, 512  ;;  %p1569_p11 = scmp.lt.s32.totalorder %s45_s6, %s45_s6 }
  0x1a   :  { %p1565_p10 = scmp.ne.s32.totalorder %s45_s6, %s1564_s7  ;;  %p1570_p12 = scmp.lt.s32.totalorder %s1564_s7, %s1564_s7 }
  0x1c   :  { %p1571_p13 = por %p1570_p12, %p1569_p11 }
  0x1e   :  { %p1572_p0 = pnand %p1571_p13, %p1565_p10 }
  0x20   :  { %1575 = shalt.err (!%p1572_p0)
}
  0x21   :  { %50 = dma.hbm_to_vmem [thread:$0]  %s1891_s3, 512, %s45_s6, [#allocation8], %s1604_s23, %s1604_s23, %s1605_s24  }
  0x22   :  { %1596 = dma.done.wait [#allocation5], 1024  }
  0x23   :  { %1597 = vsyncadd [#allocation5], 4294966272 }
  0x24   :  { %1598 = dma.done.wait [#allocation8], 1280  }
  0x25   :  { %1599 = vsyncadd [#allocation8], 4294966016  ;;  %vm62_vm0 = vcmask 392192   ;;  %v1607_v0 = vmov 0.0   ;;  %vm1608_vm1 = vmmov 0   ;;  %v1662_v1 = vld [vmem:[#allocation7 + $0x28] sm:$0xff] }
  0x26   :  { %1304 = vmatprep.subr.mxu0 %v1607_v0  ;;  %1316 = vmatprep.mubr.msk.f32.mxu0 %vm1608_vm1, %v1607_v0  ;;  %63 = vst.msk [vmem:[#allocation2] sm:$0xff] %vm62_vm0, %v1607_v0  ;;  %v1664_v2 = vld [vmem:[#allocation7 + $0x20] sm:$0xff]  ;;  %vm67_vm2 = vcmask 130048   ;;  %v1669_v3 = vld [vmem:[#allocation7 + $0x18] sm:$0xff]  ;;  %v1676_v5 = vld [vmem:[#allocation7 + $0x10] sm:$0xff]  ;;  %vm64_vm3 = vcmask 261120  }
  0x27   :  { %1319 = vmatprep.subr.mxu1 %v1607_v0  ;;  %1331 = vmatprep.mubr.msk.f32.mxu1 %vm1608_vm1, %v1607_v0  ;;  %v66_v4 = vld [vmem:[#allocation4] sm:$0xff]  ;;  %v1682_v6 = vld [vmem:[#allocation7 + $0x8] sm:$0xff]  ;;  %65 = vst.msk [vmem:[#allocation3] sm:$0xff] %vm64_vm3, %v1607_v0  ;;  %v1719_v9 = vld [vmem:[%s1890_s2] ss:$0 sm:$0xff]  ;;  %s1609_s9 = smov 64  }
  0x28   :  { %1305 = vmatpush3.msra.mxu0 %v1662_v1  ;;  %1320 = vmatpush3.msra.mxu1 %v1662_v1  ;;  %68 = vst.msk [vmem:[#allocation2] sm:$0xff] %vm67_vm2, %v66_v4  ;;  %v1688_v7 = vld [vmem:[#allocation7] sm:$0xff]  ;;  %s1610_s10 = smov 32   ;;  %s1611_s2 = smov 96   ;;  %vm194_vm4 = vcmask 392320   ;;  %v197_v30 = vld [vmem:[#allocation4 + $0x8] sm:$0xff] }
  0x29   :  { %1306 = vmatprep.subr.mxu0 %v1607_v0  ;;  %1321 = vmatprep.subr.mxu1 %v1607_v0  ;;  %s1612_s11 = smov 48   ;;  %v326_v52 = vld [vmem:[#allocation4 + $0x10] sm:$0xff]  ;;  %s1613_s12 = smov 112  }
  0x2a   :  { %1307 = vmatpush3.msra.mxu0 %v1664_v2  ;;  %1322 = vmatpush3.msra.mxu1 %v1664_v2 }
  0x2b   :  { %1308 = vmatprep.subr.mxu0 %v1607_v0  ;;  %1323 = vmatprep.subr.mxu1 %v1607_v0 }
  0x2c   :  { %1309 = vmatpush3.msra.mxu0 %v1669_v3  ;;  %1324 = vmatpush3.msra.mxu1 %v1669_v3 }
  0x2d   :  { %1310 = vmatprep.subr.mxu0 %v1607_v0  ;;  %1325 = vmatprep.subr.mxu1 %v1607_v0 }
  0x2e   :  { %1311 = vmatpush3.msra.mxu0 %v1676_v5  ;;  %1326 = vmatpush3.msra.mxu1 %v1676_v5  ;;  %v163_v14 = vld [vmem:[#allocation3] sm:$0xff] }
  0x2f   :  { %1312 = vmatprep.subr.mxu0 %v1607_v0  ;;  %1327 = vmatprep.subr.mxu1 %v1607_v0  ;;  %v69_v8 = vld [vmem:[#allocation2] sm:$0xff] }
  0x30   :  { %1313 = vmatpush3.msra.mxu0 %v1682_v6  ;;  %1328 = vmatpush3.msra.mxu1 %v1682_v6 }
  0x31   :  { %1314 = vmatprep.subr.mxu0 %v1607_v0  ;;  %1329 = vmatprep.subr.mxu1 %v1607_v0 }
  0x32   :  { %1315 = vmatpush3.msra.mxu0 %v1688_v7  ;;  %1330 = vmatpush3.msra.mxu1 %v1688_v7 }
  0x33   :  { %1317 = vmatmul.mubr.msk.f32.vlgmr.msra.gmra.mxu0 %vm62_vm0, %v69_v8  ;;  %1334 = vmatprep.subr.mxu0 %v1607_v0 }
  0x34   :  { %1335 = vmatpush3.msra.mxu0 %v1662_v1  ;;  %1346 = vmatprep.mubr.msk.f32.mxu0 %vm1608_vm1, %v1607_v0 }
  0x35   :  { %1336 = vmatprep.subr.mxu0 %v1607_v0  ;;  %1349 = vmatprep.subr.mxu1 %v1607_v0 }
  0x36   :  { %1337 = vmatpush3.msra.mxu0 %v1664_v2 }
  0x37   :  { %1338 = vmatprep.subr.mxu0 %v1607_v0 }
  0x38   :  { %1339 = vmatpush3.msra.mxu0 %v1669_v3 }
  0x39   :  { %1340 = vmatprep.subr.mxu0 %v1607_v0 }
  0x3a   :  { %1341 = vmatpush3.msra.mxu0 %v1676_v5 }
  0x3b   :  { %1342 = vmatprep.subr.mxu0 %v1607_v0 }
  0x3c   :  { %1343 = vmatpush3.msra.mxu0 %v1682_v6 }
  0x3d   :  { %1344 = vmatprep.subr.mxu0 %v1607_v0 }
  0x3e   :  { %1345 = vmatpush3.msra.mxu0 %v1688_v7 }
  0x3f   :  { %1364 = vmatprep.subr.mxu0 %v1607_v0 }
  0xf3   :  { %v152_v10 = vpop.f32.mrf.mxu0 }
  0xf4   :  { %v153_v11 = vadd.f32 %v1719_v9, %v152_v10 }
  0xf5   :  { %v1318_v12 = vpop.f32.mrf.mxu0 }
  0xf6   :  { %1448 = vtanh.f32 %v153_v11  ;;  %v1219_v15 = vmul.f32 -1.442695, %v153_v11 }
  0xf8   :  { %1450 = vpow2.f32 %v1219_v15 }
 0x103   :  { %v1449_v13 = vpop.eup %1448 }
 0x104   :  { %170 = vrot.lane.b32.xlu0 %v1449_v13, %s1609_s9 }
 0x105   :  { %v1451_v16 = vpop.eup %1450 }
 0x106   :  { %v159_v17 = vadd.f32 1.0, %v1451_v16 }
 0x108   :  { %165 = vrot.lane.b32.xlu0 %v163_v14, %s1610_s10  ;;  %1452 = vrcp.f32 %v159_v17 }
 0x115   :  { %v1453_v18 = vpop.eup %1452 }
 0x176   :  { %v171_v19 = vpop.permute.xlu0 %170 }
 0x177   :  { %v173_v20 = vmul.f32 %v1453_v18, %v171_v19 }
 0x179   :  { %175 = vrot.lane.b32.xlu1 %v173_v20, %s1610_s10 }
 0x17a   :  { %v166_v21 = vpop.permute.xlu0 %165 }
 0x17b   :  { %v168_v22 = vmul.f32 %v1453_v18, %v166_v21 }
 0x1eb   :  { %v176_v23 = vpop.permute.xlu1 %175 }
 0x1ec   :  { %v178_v24 = vadd.f32 %v176_v23, %v168_v22 }
 0x1ee   :  { %1454 = vtanh.f32 %v178_v24 }
 0x1fb   :  { %v1455_v25 = vpop.eup %1454 }
 0x1fc   :  { %186 = vrot.lane.b32.xlu1 %v1455_v25, %s1609_s9 }
 0x200   :  { %180 = vrot.lane.b32.xlu1 %v178_v24, %s1611_s2 }
 0x26e   :  { %v187_v26 = vpop.permute.xlu1 %186 }
 0x26f   :  { %v189_v27 = vmul.f32 %v1453_v18, %v187_v26  ;;  %v455_v18 = vld [vmem:[#allocation4 + $0x18] sm:$0xff] }
 0x271   :  { %191 = vrot.lane.b32.xlu0 %v189_v27, %s1612_s11 }
 0x272   :  { %v181_v28 = vpop.permute.xlu1 %180 }
 0x273   :  { %183 = vst.msk [vmem:[#allocation3] sm:$0xff] %vm64_vm3, %v181_v28 }
 0x27a   :  { %v293_v29 = vld [vmem:[#allocation3] sm:$0xff] }
 0x27b   :  { %295 = vrot.lane.b32.xlu1 %v293_v29, %s1610_s10 }
 0x2e3   :  { %v192_v31 = vpop.permute.xlu0 %191 }
 0x2e4   :  { %195 = vst.msk [vmem:[#allocation2] sm:$0xff] %vm194_vm4, %v192_v31 }
 0x2e5   :  { %198 = vst.msk [vmem:[#allocation2] sm:$0xff] %vm67_vm2, %v197_v30 }
 0x2ec   :  { %v199_v32 = vld [vmem:[#allocation2] sm:$0xff] }
 0x2ed   :  { %1332 = vmatmul.mubr.msk.f32.vlgmr.msra.gmra.mxu1 %vm62_vm0, %v199_v32  ;;  %v296_v43 = vpop.permute.xlu1 %295 }
 0x2ee   :  { %1350 = vmatpush3.msra.mxu1 %v1662_v1  ;;  %1361 = vmatprep.mubr.msk.f32.mxu1 %vm1608_vm1, %v1607_v0 }
 0x2ef   :  { %1351 = vmatprep.subr.mxu1 %v1607_v0 }
 0x2f0   :  { %1352 = vmatpush3.msra.mxu1 %v1664_v2 }
 0x2f1   :  { %1353 = vmatprep.subr.mxu1 %v1607_v0 }
 0x2f2   :  { %1354 = vmatpush3.msra.mxu1 %v1669_v3 }
 0x2f3   :  { %1355 = vmatprep.subr.mxu1 %v1607_v0 }
 0x2f4   :  { %1356 = vmatpush3.msra.mxu1 %v1676_v5 }
 0x2f5   :  { %1357 = vmatprep.subr.mxu1 %v1607_v0 }
 0x2f6   :  { %1358 = vmatpush3.msra.mxu1 %v1682_v6 }
 0x2f7   :  { %1359 = vmatprep.subr.mxu1 %v1607_v0 }
 0x2f8   :  { %1360 = vmatpush3.msra.mxu1 %v1688_v7 }
 0x2f9   :  { %1379 = vmatprep.subr.mxu1 %v1607_v0 }
 0x3ad   :  { %v282_v33 = vpop.f32.mrf.mxu1 }
 0x3ae   :  { %v283_v34 = vadd.f32 %v1719_v9, %v282_v33 }
 0x3af   :  { %v1333_v35 = vpop.f32.mrf.mxu1 }
 0x3b0   :  { %1456 = vtanh.f32 %v283_v34  ;;  %v1222_v37 = vmul.f32 -1.442695, %v283_v34 }
 0x3b2   :  { %1458 = vpow2.f32 %v1222_v37 }
 0x3bd   :  { %v1457_v36 = vpop.eup %1456 }
 0x3be   :  { %300 = vrot.lane.b32.xlu0 %v1457_v36, %s1609_s9 }
 0x3bf   :  { %v1459_v38 = vpop.eup %1458 }
 0x3c0   :  { %v289_v39 = vadd.f32 1.0, %v1459_v38 }
 0x3c2   :  { %1460 = vrcp.f32 %v289_v39 }
 0x3cf   :  { %v1461_v40 = vpop.eup %1460 }
 0x3d0   :  { %v298_v44 = vmul.f32 %v1461_v40, %v296_v43 }
 0x430   :  { %v301_v41 = vpop.permute.xlu0 %300 }
 0x431   :  { %v303_v42 = vmul.f32 %v1461_v40, %v301_v41 }
 0x433   :  { %305 = vrot.lane.b32.xlu0 %v303_v42, %s1610_s10 }
 0x4a5   :  { %v306_v45 = vpop.permute.xlu0 %305 }
 0x4a6   :  { %v308_v46 = vadd.f32 %v306_v45, %v298_v44 }
 0x4a8   :  { %1462 = vtanh.f32 %v308_v46 }
 0x4b5   :  { %v1463_v47 = vpop.eup %1462 }
 0x4b6   :  { %316 = vrot.lane.b32.xlu1 %v1463_v47, %s1609_s9 }
 0x4ba   :  { %310 = vrot.lane.b32.xlu1 %v308_v46, %s1611_s2 }
 0x528   :  { %v317_v48 = vpop.permute.xlu1 %316 }
 0x529   :  { %v319_v49 = vmul.f32 %v1461_v40, %v317_v48  ;;  %v584_v40 = vld [vmem:[#allocation4 + $0x20] sm:$0xff] }
 0x52b   :  { %321 = vrot.lane.b32.xlu0 %v319_v49, %s1612_s11 }
 0x52c   :  { %v311_v50 = vpop.permute.xlu1 %310 }
 0x52d   :  { %313 = vst.msk [vmem:[#allocation3] sm:$0xff] %vm64_vm3, %v311_v50 }
 0x534   :  { %v422_v51 = vld [vmem:[#allocation3] sm:$0xff] }
 0x535   :  { %424 = vrot.lane.b32.xlu1 %v422_v51, %s1610_s10 }
 0x59d   :  { %v322_v53 = vpop.permute.xlu0 %321 }
 0x59e   :  { %324 = vst.msk [vmem:[#allocation2] sm:$0xff] %vm194_vm4, %v322_v53 }
 0x59f   :  { %327 = vst.msk [vmem:[#allocation2] sm:$0xff] %vm67_vm2, %v326_v52 }
 0x5a6   :  { %v328_v54 = vld [vmem:[#allocation2] sm:$0xff] }
 0x5a7   :  { %1347 = vmatmul.mubr.msk.f32.vlgmr.msra.gmra.mxu0 %vm62_vm0, %v328_v54  ;;  %v425_v8 = vpop.permute.xlu1 %424 }
 0x5a8   :  { %1365 = vmatpush3.msra.mxu0 %v1662_v1  ;;  %1376 = vmatprep.mubr.msk.f32.mxu0 %vm1608_vm1, %v1607_v0 }
 0x5a9   :  { %1366 = vmatprep.subr.mxu0 %v1607_v0 }
 0x5aa   :  { %1367 = vmatpush3.msra.mxu0 %v1664_v2 }
 0x5ab   :  { %1368 = vmatprep.subr.mxu0 %v1607_v0 }
 0x5ac   :  { %1369 = vmatpush3.msra.mxu0 %v1669_v3 }
 0x5ad   :  { %1370 = vmatprep.subr.mxu0 %v1607_v0 }
 0x5ae   :  { %1371 = vmatpush3.msra.mxu0 %v1676_v5 }
 0x5af   :  { %1372 = vmatprep.subr.mxu0 %v1607_v0 }
 0x5b0   :  { %1373 = vmatpush3.msra.mxu0 %v1682_v6 }
 0x5b1   :  { %1374 = vmatprep.subr.mxu0 %v1607_v0 }
 0x5b2   :  { %1375 = vmatpush3.msra.mxu0 %v1688_v7 }
 0x5b3   :  { %1394 = vmatprep.subr.mxu0 %v1607_v0 }
 0x667   :  { %v411_v55 = vpop.f32.mrf.mxu0 }
 0x668   :  { %v412_v56 = vadd.f32 %v1719_v9, %v411_v55 }
 0x669   :  { %v1348_v57 = vpop.f32.mrf.mxu0 }
 0x66a   :  { %1464 = vtanh.f32 %v412_v56  ;;  %v1225_v59 = vmul.f32 -1.442695, %v412_v56 }
 0x66c   :  { %1466 = vpow2.f32 %v1225_v59 }
 0x677   :  { %v1465_v58 = vpop.eup %1464 }
 0x678   :  { %429 = vrot.lane.b32.xlu0 %v1465_v58, %s1609_s9 }
 0x679   :  { %v1467_v60 = vpop.eup %1466 }
 0x67a   :  { %v418_v61 = vadd.f32 1.0, %v1467_v60 }
 0x67c   :  { %1468 = vrcp.f32 %v418_v61 }
 0x689   :  { %v1469_v62 = vpop.eup %1468 }
 0x68a   :  { %v427_v10 = vmul.f32 %v1469_v62, %v425_v8 }
 0x6ea   :  { %v430_v63 = vpop.permute.xlu0 %429 }
 0x6eb   :  { %v432_v4 = vmul.f32 %v1469_v62, %v430_v63 }
 0x6ed   :  { %434 = vrot.lane.b32.xlu0 %v432_v4, %s1610_s10 }
 0x75f   :  { %v435_v11 = vpop.permute.xlu0 %434 }
 0x760   :  { %v437_v12 = vadd.f32 %v435_v11, %v427_v10 }
 0x762   :  { %1470 = vtanh.f32 %v437_v12 }
 0x76f   :  { %v1471_v13 = vpop.eup %1470 }
 0x770   :  { %445 = vrot.lane.b32.xlu1 %v1471_v13, %s1609_s9 }
 0x774   :  { %439 = vrot.lane.b32.xlu1 %v437_v12, %s1611_s2 }
 0x7e2   :  { %v446_v14 = vpop.permute.xlu1 %445 }
 0x7e3   :  { %v448_v15 = vmul.f32 %v1469_v62, %v446_v14  ;;  %v713_v62 = vld [vmem:[#allocation4 + $0x28] sm:$0xff] }
 0x7e5   :  { %450 = vrot.lane.b32.xlu0 %v448_v15, %s1612_s11 }
 0x7e6   :  { %v440_v16 = vpop.permute.xlu1 %439 }
 0x7e7   :  { %442 = vst.msk [vmem:[#allocation3] sm:$0xff] %vm64_vm3, %v440_v16 }
 0x7ee   :  { %v551_v17 = vld [vmem:[#allocation3] sm:$0xff] }
 0x7ef   :  { %553 = vrot.lane.b32.xlu1 %v551_v17, %s1610_s10 }
 0x857   :  { %v451_v19 = vpop.permute.xlu0 %450 }
 0x858   :  { %453 = vst.msk [vmem:[#allocation2] sm:$0xff] %vm194_vm4, %v451_v19 }
 0x859   :  { %456 = vst.msk [vmem:[#allocation2] sm:$0xff] %vm67_vm2, %v455_v18 }
 0x860   :  { %v457_v20 = vld [vmem:[#allocation2] sm:$0xff] }
 0x861   :  { %1362 = vmatmul.mubr.msk.f32.vlgmr.msra.gmra.mxu1 %vm62_vm0, %v457_v20  ;;  %v554_v31 = vpop.permute.xlu1 %553 }
 0x862   :  { %1380 = vmatpush3.msra.mxu1 %v1662_v1  ;;  %1391 = vmatprep.mubr.msk.f32.mxu1 %vm1608_vm1, %v1607_v0 }
 0x863   :  { %1381 = vmatprep.subr.mxu1 %v1607_v0 }
 0x864   :  { %1382 = vmatpush3.msra.mxu1 %v1664_v2 }
 0x865   :  { %1383 = vmatprep.subr.mxu1 %v1607_v0 }
 0x866   :  { %1384 = vmatpush3.msra.mxu1 %v1669_v3 }
 0x867   :  { %1385 = vmatprep.subr.mxu1 %v1607_v0 }
 0x868   :  { %1386 = vmatpush3.msra.mxu1 %v1676_v5 }
 0x869   :  { %1387 = vmatprep.subr.mxu1 %v1607_v0 }
 0x86a   :  { %1388 = vmatpush3.msra.mxu1 %v1682_v6 }
 0x86b   :  { %1389 = vmatprep.subr.mxu1 %v1607_v0 }
 0x86c   :  { %1390 = vmatpush3.msra.mxu1 %v1688_v7 }
 0x86d   :  { %1409 = vmatprep.subr.mxu1 %v1607_v0 }
 0x921   :  { %v540_v21 = vpop.f32.mrf.mxu1 }
 0x922   :  { %v541_v22 = vadd.f32 %v1719_v9, %v540_v21 }
 0x923   :  { %v1363_v23 = vpop.f32.mrf.mxu1 }
 0x924   :  { %1472 = vtanh.f32 %v541_v22  ;;  %v1228_v25 = vmul.f32 -1.442695, %v541_v22  ;;  %v842_v22 = vld [vmem:[#allocation4 + $0x30] sm:$0xff] }
 0x926   :  { %1474 = vpow2.f32 %v1228_v25 }
 0x931   :  { %v1473_v24 = vpop.eup %1472 }
 0x932   :  { %558 = vrot.lane.b32.xlu0 %v1473_v24, %s1609_s9 }
 0x933   :  { %v1475_v26 = vpop.eup %1474 }
 0x934   :  { %v547_v27 = vadd.f32 1.0, %v1475_v26 }
 0x936   :  { %1476 = vrcp.f32 %v547_v27 }
 0x943   :  { %v1477_v28 = vpop.eup %1476 }
 0x944   :  { %v556_v32 = vmul.f32 %v1477_v28, %v554_v31 }
 0x9a4   :  { %v559_v29 = vpop.permute.xlu0 %558 }
 0x9a5   :  { %v561_v30 = vmul.f32 %v1477_v28, %v559_v29 }
 0x9a7   :  { %563 = vrot.lane.b32.xlu0 %v561_v30, %s1610_s10 }
 0xa19   :  { %v564_v33 = vpop.permute.xlu0 %563 }
 0xa1a   :  { %v566_v34 = vadd.f32 %v564_v33, %v556_v32 }
 0xa1c   :  { %1478 = vtanh.f32 %v566_v34 }
 0xa29   :  { %v1479_v35 = vpop.eup %1478 }
 0xa2a   :  { %574 = vrot.lane.b32.xlu1 %v1479_v35, %s1609_s9 }
 0xa2e   :  { %568 = vrot.lane.b32.xlu1 %v566_v34, %s1611_s2 }
 0xa9c   :  { %v575_v36 = vpop.permute.xlu1 %574 }
 0xa9d   :  { %v577_v37 = vmul.f32 %v1477_v28, %v575_v36 }
 0xa9f   :  { %579 = vrot.lane.b32.xlu0 %v577_v37, %s1612_s11 }
 0xaa0   :  { %v569_v38 = vpop.permute.xlu1 %568 }
 0xaa1   :  { %571 = vst.msk [vmem:[#allocation3] sm:$0xff] %vm64_vm3, %v569_v38 }
 0xaa8   :  { %v680_v39 = vld [vmem:[#allocation3] sm:$0xff] }
 0xaa9   :  { %682 = vrot.lane.b32.xlu1 %v680_v39, %s1610_s10 }
 0xb11   :  { %v580_v41 = vpop.permute.xlu0 %579 }
 0xb12   :  { %582 = vst.msk [vmem:[#allocation2] sm:$0xff] %vm194_vm4, %v580_v41 }
 0xb13   :  { %585 = vst.msk [vmem:[#allocation2] sm:$0xff] %vm67_vm2, %v584_v40 }
 0xb1a   :  { %v586_v42 = vld [vmem:[#allocation2] sm:$0xff] }
 0xb1b   :  { %1377 = vmatmul.mubr.msk.f32.vlgmr.msra.gmra.mxu0 %vm62_vm0, %v586_v42  ;;  %v683_v53 = vpop.permute.xlu1 %682 }
 0xb1c   :  { %1395 = vmatpush3.msra.mxu0 %v1662_v1  ;;  %1406 = vmatprep.mubr.msk.f32.mxu0 %vm1608_vm1, %v1607_v0 }
 0xb1d   :  { %1396 = vmatprep.subr.mxu0 %v1607_v0 }
 0xb1e   :  { %1397 = vmatpush3.msra.mxu0 %v1664_v2 }
 0xb1f   :  { %1398 = vmatprep.subr.mxu0 %v1607_v0 }
 0xb20   :  { %1399 = vmatpush3.msra.mxu0 %v1669_v3 }
 0xb21   :  { %1400 = vmatprep.subr.mxu0 %v1607_v0 }
 0xb22   :  { %1401 = vmatpush3.msra.mxu0 %v1676_v5 }
 0xb23   :  { %1402 = vmatprep.subr.mxu0 %v1607_v0 }
 0xb24   :  { %1403 = vmatpush3.msra.mxu0 %v1682_v6 }
 0xb25   :  { %1404 = vmatprep.subr.mxu0 %v1607_v0 }
 0xb26   :  { %1405 = vmatpush3.msra.mxu0 %v1688_v7 }
 0xb27   :  { %1424 = vmatprep.subr.mxu0 %v1607_v0 }
 0xbdb   :  { %v669_v43 = vpop.f32.mrf.mxu0 }
 0xbdc   :  { %v670_v44 = vadd.f32 %v1719_v9, %v669_v43 }
 0xbdd   :  { %v1378_v45 = vpop.f32.mrf.mxu0 }
 0xbde   :  { %1480 = vtanh.f32 %v670_v44  ;;  %v1231_v47 = vmul.f32 -1.442695, %v670_v44  ;;  %v971_v44 = vld [vmem:[#allocation4 + $0x38] sm:$0xff] }
 0xbe0   :  { %1482 = vpow2.f32 %v1231_v47 }
 0xbeb   :  { %v1481_v46 = vpop.eup %1480 }
 0xbec   :  { %687 = vrot.lane.b32.xlu0 %v1481_v46, %s1609_s9 }
 0xbed   :  { %v1483_v48 = vpop.eup %1482 }
 0xbee   :  { %v676_v49 = vadd.f32 1.0, %v1483_v48 }
 0xbf0   :  { %1484 = vrcp.f32 %v676_v49 }
 0xbfd   :  { %v1485_v50 = vpop.eup %1484 }
 0xbfe   :  { %v685_v54 = vmul.f32 %v1485_v50, %v683_v53 }
 0xc5e   :  { %v688_v51 = vpop.permute.xlu0 %687 }
 0xc5f   :  { %v690_v52 = vmul.f32 %v1485_v50, %v688_v51 }
 0xc61   :  { %692 = vrot.lane.b32.xlu0 %v690_v52, %s1610_s10 }
 0xcd3   :  { %v693_v55 = vpop.permute.xlu0 %692 }
 0xcd4   :  { %v695_v56 = vadd.f32 %v693_v55, %v685_v54 }
 0xcd6   :  { %1486 = vtanh.f32 %v695_v56 }
 0xce3   :  { %v1487_v57 = vpop.eup %1486 }
 0xce4   :  { %703 = vrot.lane.b32.xlu1 %v1487_v57, %s1609_s9 }
 0xce8   :  { %697 = vrot.lane.b32.xlu1 %v695_v56, %s1611_s2 }
 0xd56   :  { %v704_v58 = vpop.permute.xlu1 %703 }
 0xd57   :  { %v706_v59 = vmul.f32 %v1485_v50, %v704_v58 }
 0xd59   :  { %708 = vrot.lane.b32.xlu0 %v706_v59, %s1612_s11 }
 0xd5a   :  { %v698_v60 = vpop.permute.xlu1 %697 }
 0xd5b   :  { %700 = vst.msk [vmem:[#allocation3] sm:$0xff] %vm64_vm3, %v698_v60 }
 0xd62   :  { %v809_v61 = vld [vmem:[#allocation3] sm:$0xff] }
 0xd63   :  { %811 = vrot.lane.b32.xlu1 %v809_v61, %s1610_s10  ;;  %v1103_v61 = vld [vmem:[#allocation9 + $0x18] sm:$0xff] }
 0xdcb   :  { %v709_v63 = vpop.permute.xlu0 %708 }
 0xdcc   :  { %711 = vst.msk [vmem:[#allocation2] sm:$0xff] %vm194_vm4, %v709_v63 }
 0xdcd   :  { %714 = vst.msk [vmem:[#allocation2] sm:$0xff] %vm67_vm2, %v713_v62  ;;  %v1102_v62 = vld [vmem:[#allocation9 + $0x10] sm:$0xff] }
 0xdd4   :  { %v715_v4 = vld [vmem:[#allocation2] sm:$0xff] }
 0xdd5   :  { %1392 = vmatmul.mubr.msk.f32.vlgmr.msra.gmra.mxu1 %vm62_vm0, %v715_v4  ;;  %v812_v14 = vpop.permute.xlu1 %811  ;;  %v1101_v4 = vld [vmem:[#allocation9 + $0x8] sm:$0xff] }
 0xdd6   :  { %1410 = vmatpush3.msra.mxu1 %v1662_v1  ;;  %1421 = vmatprep.mubr.msk.f32.mxu1 %vm1608_vm1, %v1607_v0 }
 0xdd7   :  { %1411 = vmatprep.subr.mxu1 %v1607_v0 }
 0xdd8   :  { %1412 = vmatpush3.msra.mxu1 %v1664_v2 }
 0xdd9   :  { %1413 = vmatprep.subr.mxu1 %v1607_v0 }
 0xdda   :  { %1414 = vmatpush3.msra.mxu1 %v1669_v3 }
 0xddb   :  { %1415 = vmatprep.subr.mxu1 %v1607_v0 }
 0xddc   :  { %1416 = vmatpush3.msra.mxu1 %v1676_v5 }
 0xddd   :  { %1417 = vmatprep.subr.mxu1 %v1607_v0 }
 0xdde   :  { %1418 = vmatpush3.msra.mxu1 %v1682_v6 }
 0xddf   :  { %1419 = vmatprep.subr.mxu1 %v1607_v0 }
 0xde0   :  { %1420 = vmatpush3.msra.mxu1 %v1688_v7 }
 0xe95   :  { %v798_v1 = vpop.f32.mrf.mxu1 }
 0xe96   :  { %v799_v8 = vadd.f32 %v1719_v9, %v798_v1 }
 0xe97   :  { %v1393_v2 = vpop.f32.mrf.mxu1 }
 0xe98   :  { %1488 = vtanh.f32 %v799_v8  ;;  %v1234_v3 = vmul.f32 -1.442695, %v799_v8  ;;  %v1100_v8 = vld [vmem:[#allocation9] sm:$0xff] }
 0xe9a   :  { %1490 = vpow2.f32 %v1234_v3 }
 0xea5   :  { %v1489_v10 = vpop.eup %1488 }
 0xea6   :  { %816 = vrot.lane.b32.xlu0 %v1489_v10, %s1609_s9 }
 0xea7   :  { %v1491_v11 = vpop.eup %1490 }
 0xea8   :  { %v805_v5 = vadd.f32 1.0, %v1491_v11  ;;  %v1186_v11 = vlaneseq }
 0xeaa   :  { %1492 = vrcp.f32 %v805_v5  ;;  %v1187_v5 = vand.u32 127, %v1186_v11 }
 0xeac   :  { %vm1188_vm5 = vcmp.lt.s32.totalorder %v1187_v5, 4 }
 0xeb7   :  { %v1493_v12 = vpop.eup %1492 }
 0xeb8   :  { %v814_v7 = vmul.f32 %v1493_v12, %v812_v14 }
 0xf18   :  { %v817_v13 = vpop.permute.xlu0 %816 }
 0xf19   :  { %v819_v6 = vmul.f32 %v1493_v12, %v817_v13 }
 0xf1b   :  { %821 = vrot.lane.b32.xlu0 %v819_v6, %s1610_s10 }
 0xf8d   :  { %v822_v15 = vpop.permute.xlu0 %821 }
 0xf8e   :  { %v824_v16 = vadd.f32 %v822_v15, %v814_v7 }
 0xf90   :  { %1494 = vtanh.f32 %v824_v16 }
 0xf9d   :  { %v1495_v17 = vpop.eup %1494 }
 0xf9e   :  { %832 = vrot.lane.b32.xlu1 %v1495_v17, %s1609_s9 }
 0xfa2   :  { %826 = vrot.lane.b32.xlu1 %v824_v16, %s1611_s2 }
0x1010   :  { %v833_v18 = vpop.permute.xlu1 %832 }
0x1011   :  { %v835_v19 = vmul.f32 %v1493_v12, %v833_v18  ;;  %v1241_v12 = vld [vmem:[%s1892_s4] ss:$0 sm:$0xff]  ;;  %s1614_s4 = smov [#allocation10]  }
0x1012   :  { %s1207_s15 = sshll.u32 %s1614_s4, 4  ;;  %s1208_s15 = int_to_ptr.vmem [resolvable:$true] %s1207_s15 }
0x1013   :  { %837 = vrot.lane.b32.xlu0 %v835_v19, %s1612_s11  ;;  %s1576_s16 = scalar_lea.vmem %s1208_s15, 128  ;;  %p1581_p2 = scmp.lt.s32.totalorder %s1208_s15, %s1208_s15 }
0x1014   :  { %v827_v20 = vpop.permute.xlu1 %826  ;;  %p1577_p1 = scmp.ne.s32.totalorder %s1208_s15, %s1576_s16  ;;  %p1582_p3 = scmp.lt.s32.totalorder %s1576_s16, %s1576_s16 }
0x1015   :  { %829 = vst.msk [vmem:[#allocation3] sm:$0xff] %vm64_vm3, %v827_v20 }
0x1016   :  { %p1583_p4 = por %p1582_p3, %p1581_p2 }
0x1018   :  { %p1584_p5 = pnand %p1583_p4, %p1577_p1 }
0x101c   :  { %v938_v21 = vld [vmem:[#allocation3] sm:$0xff] }
0x101d   :  { %940 = vrot.lane.b32.xlu1 %v938_v21, %s1610_s10 }
0x1085   :  { %v838_v23 = vpop.permute.xlu0 %837 }
0x1086   :  { %840 = vst.msk [vmem:[#allocation2] sm:$0xff] %vm194_vm4, %v838_v23 }
0x1087   :  { %843 = vst.msk [vmem:[#allocation2] sm:$0xff] %vm67_vm2, %v842_v22 }
0x108e   :  { %v844_v24 = vld [vmem:[#allocation2] sm:$0xff] }
0x108f   :  { %1407 = vmatmul.mubr.msk.f32.vlgmr.msra.gmra.mxu0 %vm62_vm0, %v844_v24  ;;  %v941_v35 = vpop.permute.xlu1 %940 }
0x1090   :  { %1432 = vmatprep.mubr.msk.f32.mxu0 %vm1608_vm1, %v1607_v0  ;;  %1425 = vmatpush3.msra.mxu0 %v1103_v61 }
0x1091   :  { %1426 = vmatprep.subr.mxu0 %v1607_v0 }
0x1092   :  { %1427 = vmatpush3.msra.mxu0 %v1102_v62 }
0x1093   :  { %1428 = vmatprep.subr.mxu0 %v1607_v0 }
0x1094   :  { %1429 = vmatpush3.msra.mxu0 %v1101_v4 }
0x1095   :  { %1430 = vmatprep.subr.mxu0 %v1607_v0 }
0x1096   :  { %1431 = vmatpush3.msra.mxu0 %v1100_v8 }
0x114f   :  { %v927_v25 = vpop.f32.mrf.mxu0 }
0x1150   :  { %v928_v26 = vadd.f32 %v1719_v9, %v927_v25 }
0x1151   :  { %v1408_v27 = vpop.f32.mrf.mxu0 }
0x1152   :  { %1496 = vtanh.f32 %v928_v26  ;;  %v1237_v29 = vmul.f32 -1.442695, %v928_v26 }
0x1154   :  { %1498 = vpow2.f32 %v1237_v29 }
0x115f   :  { %v1497_v28 = vpop.eup %1496 }
0x1160   :  { %945 = vrot.lane.b32.xlu0 %v1497_v28, %s1609_s9 }
0x1161   :  { %v1499_v30 = vpop.eup %1498 }
0x1162   :  { %v934_v31 = vadd.f32 1.0, %v1499_v30 }
0x1164   :  { %1500 = vrcp.f32 %v934_v31 }
0x1171   :  { %v1501_v32 = vpop.eup %1500 }
0x1172   :  { %v943_v36 = vmul.f32 %v1501_v32, %v941_v35 }
0x11d2   :  { %v946_v33 = vpop.permute.xlu0 %945 }
0x11d3   :  { %v948_v34 = vmul.f32 %v1501_v32, %v946_v33 }
0x11d5   :  { %950 = vrot.lane.b32.xlu0 %v948_v34, %s1610_s10 }
0x1247   :  { %v951_v37 = vpop.permute.xlu0 %950 }
0x1248   :  { %v953_v38 = vadd.f32 %v951_v37, %v943_v36 }
0x124a   :  { %1502 = vtanh.f32 %v953_v38 }
0x1257   :  { %v1503_v39 = vpop.eup %1502 }
0x1258   :  { %961 = vrot.lane.b32.xlu1 %v1503_v39, %s1609_s9 }
0x125c   :  { %955 = vrot.lane.b32.xlu1 %v953_v38, %s1611_s2 }
0x12ca   :  { %v962_v40 = vpop.permute.xlu1 %961 }
0x12cb   :  { %v964_v41 = vmul.f32 %v1501_v32, %v962_v40 }
0x12cd   :  { %966 = vrot.lane.b32.xlu0 %v964_v41, %s1612_s11 }
0x12ce   :  { %v956_v42 = vpop.permute.xlu1 %955 }
0x12cf   :  { %958 = vst.msk [vmem:[#allocation3] sm:$0xff] %vm64_vm3, %v956_v42 }
0x12d6   :  { %v1067_v43 = vld [vmem:[#allocation3] sm:$0xff] }
0x12d7   :  { %1069 = vrot.lane.b32.xlu1 %v1067_v43, %s1610_s10 }
0x133f   :  { %v967_v45 = vpop.permute.xlu0 %966 }
0x1340   :  { %969 = vst.msk [vmem:[#allocation2] sm:$0xff] %vm194_vm4, %v967_v45 }
0x1341   :  { %972 = vst.msk [vmem:[#allocation2] sm:$0xff] %vm67_vm2, %v971_v44 }
0x1348   :  { %v973_v46 = vld [vmem:[#allocation2] sm:$0xff] }
0x1349   :  { %1422 = vmatmul.mubr.msk.f32.vlgmr.msra.gmra.mxu1 %vm62_vm0, %v973_v46  ;;  %v1070_v57 = vpop.permute.xlu1 %1069 }
0x1409   :  { %v1056_v47 = vpop.f32.mrf.mxu1 }
0x140a   :  { %v1057_v48 = vadd.f32 %v1719_v9, %v1056_v47 }
0x140b   :  { %v1423_v49 = vpop.f32.mrf.mxu1 }
0x140c   :  { %1504 = vtanh.f32 %v1057_v48  ;;  %v1240_v51 = vmul.f32 -1.442695, %v1057_v48 }
0x140e   :  { %1506 = vpow2.f32 %v1240_v51 }
0x1419   :  { %v1505_v50 = vpop.eup %1504 }
0x141a   :  { %1074 = vrot.lane.b32.xlu0 %v1505_v50, %s1609_s9 }
0x141b   :  { %v1507_v52 = vpop.eup %1506 }
0x141c   :  { %v1063_v53 = vadd.f32 1.0, %v1507_v52 }
0x141e   :  { %1508 = vrcp.f32 %v1063_v53 }
0x142b   :  { %v1509_v54 = vpop.eup %1508 }
0x142c   :  { %v1072_v58 = vmul.f32 %v1509_v54, %v1070_v57 }
0x148c   :  { %v1075_v55 = vpop.permute.xlu0 %1074 }
0x148d   :  { %v1077_v56 = vmul.f32 %v1509_v54, %v1075_v55 }
0x148f   :  { %1079 = vrot.lane.b32.xlu0 %v1077_v56, %s1610_s10 }
0x1501   :  { %v1080_v59 = vpop.permute.xlu0 %1079 }
0x1502   :  { %v1082_v60 = vadd.f32 %v1080_v59, %v1072_v58 }
0x1504   :  { %1510 = vtanh.f32 %v1082_v60 }
0x1511   :  { %v1511_v9 = vpop.eup %1510 }
0x1512   :  { %1090 = vrot.lane.b32.xlu1 %v1511_v9, %s1609_s9 }
0x1584   :  { %v1091_v63 = vpop.permute.xlu1 %1090 }
0x1585   :  { %v1093_v1 = vmul.f32 %v1509_v54, %v1091_v63 }
0x1587   :  { %1095 = vrot.lane.b32.xlu0 %v1093_v1, %s1612_s11 }
0x15f9   :  { %v1096_v2 = vpop.permute.xlu0 %1095 }
0x15fa   :  { %1098 = vst.msk [vmem:[#allocation2] sm:$0xff] %vm194_vm4, %v1096_v2 }
0x1601   :  { %v1099_v10 = vld [vmem:[#allocation2] sm:$0xff] }
0x1602   :  { %1112 = vrot.lane.b32.xlu1 %v1099_v10, %s1613_s12 }
0x1674   :  { %v1113_v3 = vpop.permute.xlu1 %1112 }
0x1675   :  { %1433 = vmatmul.mubr.msk.f32.vlgmr.msra.gmra.mxu0 %vm64_vm3, %v1113_v3 }
0x1735   :  { %v1182_v13 = vpop.f32.mrf.mxu0 }
0x1736   :  { %v1183_v6 = vadd.f32 %v1241_v12, %v1182_v13 }
0x1737   :  { %v1434_v0 = vpop.f32.mrf.mxu0 }
0x1738   :  { %v1189_v14 = vsel %vm1188_vm5, %v1183_v6, -1e+30 }
0x1739   :  { %1190 = vmax.xlane.f32.xlu0 %v1189_v14 }
0x174f   :  { %1084 = vrot.lane.b32.xlu0 %v1082_v60, %s1611_s2 }
0x17c2   :  { %v1191_v7 = vpop.xlane.xlu0 %1190 }
0x17c3   :  { %v1192_v15 = vsub.f32 %v1189_v14, %v1191_v7 }
0x17c5   :  { %v1193_v16 = vmul.f32 1.442695, %v1192_v15 }
0x17c6   :  { %v1085_v17 = vpop.permute.xlu0 %1084 }
0x17c7   :  { %1512 = vpow2.f32 %v1193_v16  ;;  %1087 = vst.msk [vmem:[#allocation3] sm:$0xff] %vm64_vm3, %v1085_v17 }
0x17d4   :  { %v1513_v18 = vpop.eup %1512 }
0x17d5   :  { %v1195_v19 = vsel %vm1188_vm5, %v1513_v18, 0.0 }
0x17d6   :  { %1196 = vadd.xlane.f32.xlu1 %v1195_v19 }
0x185f   :  { %v1197_v20 = vpop.xlane.xlu1 %1196 }
0x1860   :  { %1514 = vrcp.f32 %v1197_v20 }
0x186d   :  { %v1515_v21 = vpop.eup %1514 }
0x186e   :  { %v1199_v22 = vmul.f32 %v1515_v21, %v1195_v19 }
0x1870   :  { %1200 = vst [vmem:[#allocation10] sm:$0xff] %v1199_v22 }
0x1871   :  { %1587 = shalt.err (!%p1584_p5)
}
0x1872   :  { %1210 = dma.vmem_to_hbm [thread:$0]  %s1208_s15, 128, %s1893_s5, [#allocation6]  }
0x1873   :  { %1600 = dma.done.wait [#allocation6], 128  }
0x1874   :  { %1601 = vsyncadd [#allocation6], 4294967168 }
0x1875   :  { %1214 = vsyncpa [#allocation5], 1 }
0x1876   :  { %1215 = vsyncpa [#allocation8], 1 }
0x1877   :  { %1216 = vsyncpa [#allocation6], 1 }

</bundles_post_ra>
